<compile_context>
chip_gen: v5e
topology: v5e:2x2
jax: 0.10.0
libtpu: 0.0.40
codegen_flags: <defaults>
</compile_context>

<pallas_src>
import jax
import jax.numpy as jnp
from jax.experimental import pallas as pl
from jax.experimental.pallas import tpu as pltpu

# ---------------------------------------------------------------------------
# Model hyper-parameters (small, deterministic synthetic model)
# ---------------------------------------------------------------------------
BATCH = 2
C_IN = 4
H = W = 16
K = 3
C_OUT = 32
NUM_CLASSES = 10


# ---------------------------------------------------------------------------
# Pallas kernel: conv-matmul + ReLU + MXU global-avg-pool + FC + softmax
# One invocation handles the full batch.
# ---------------------------------------------------------------------------
def _classifier_kernel(patches_ref, wconv_ref, bconv_ref, pool_ref, wfc_ref,
                       bfc_ref, out_ref):
    # patches_ref : (K*K*C_IN, B*H*W) bf16 -- transposed im2col (lane-dense columns)
    # wconv_ref   : (C_OUT, K*K*C_IN)  bf16
    # bconv_ref   : (C_OUT, 1)         f32
    # pool_ref    : (B*H*W, B)         f32 -- block-diag 1/(H*W) pooling matrix
    # wfc_ref     : (NUM_CLASSES, C_OUT) f32
    # bfc_ref     : (NUM_CLASSES, 1)   f32
    # out_ref     : (NUM_CLASSES, B)   f32 -- softmax over axis 0 (class dim)

    # Conv as a single bf16 MXU matmul over the whole batch, f32 accumulate.
    h = jnp.dot(wconv_ref[...], patches_ref[...],
                preferred_element_type=jnp.float32)          # (C_OUT, B*H*W)
    # Lane-dense bias + ReLU on the VPU (bias broadcasts across lanes).
    h = jnp.maximum(h + bconv_ref[...], 0.0)

    # Global average pool via a second MXU matmul against the precomputed
    # 1/(H*W) pooling matrix (no XLU reduce, no divide).
    pooled = jnp.dot(h, pool_ref[...],
                     preferred_element_type=jnp.float32)     # (C_OUT, B)

    # Fully-connected classifier head, kept transposed (classes on sublanes).
    logits = jnp.dot(wfc_ref[...], pooled,
                     preferred_element_type=jnp.float32) + bfc_ref[...]  # (NC, B)

    # Softmax over the class dimension (axis 0 here == dim=1 of the module output).
    m = jnp.max(logits, axis=0, keepdims=True)
    e = jnp.exp(logits - m)
    out_ref[...] = (e / jnp.sum(e, axis=0, keepdims=True)).astype(out_ref.dtype)


# ---------------------------------------------------------------------------
# Wrapper: layout conversion, im2col (glue), pallas_call
# ---------------------------------------------------------------------------
def _im2col_transposed(x_nchw):
    """NCHW f32 -> (K*K*C_IN, B*H*W) patch matrix (same padding, stride 1).

    Column n = b*H*W + y*W + x; feature order along rows is (ky, kx, cin).
    """
    b, c, h, w = x_nchw.shape
    x = jnp.transpose(x_nchw, (0, 2, 3, 1))                      # NHWC
    xp = jnp.pad(x, ((0, 0), (1, 1), (1, 1), (0, 0)))            # pad=1
    cols = []
    for ky in range(K):
        for kx in range(K):
            cols.append(xp[:, ky:ky + h, kx:kx + w, :])          # (B,H,W,C_IN)
    patches = jnp.concatenate(cols, axis=-1)                     # (B,H,W,K*K*C_IN)
    return patches.reshape(b * h * w, K * K * c).T               # (K*K*C_IN, B*H*W)
    # TODO(synk): at realistic resolutions, do im2col inside the kernel
    # (shifted pl.ds reads of an NHWC tile) instead of materializing a
    # K*K-amplified patch matrix in HBM.


def image_classification_forward(x_nchw, params):
    wconv_t, bconv, wfc_t, bfc = params
    b = x_nchw.shape[0]
    hw = H * W
    kkc = K * K * C_IN

    # Glue (layout only): im2col, transposes, bf16 casts, pooling matrix.
    patches_t = _im2col_transposed(x_nchw.astype(jnp.float32)).astype(jnp.bfloat16)
    wconv_bf16 = wconv_t.astype(jnp.bfloat16)                    # (C_OUT, K*K*C_IN)
    bconv2 = bconv.reshape(C_OUT, 1).astype(jnp.float32)
    bfc2 = bfc.reshape(NUM_CLASSES, 1).astype(jnp.float32)
    # Block-diagonal pooling matrix: column b averages image b's H*W positions.
    pool_mat = jnp.kron(jnp.eye(b, dtype=jnp.float32),
                        jnp.full((hw, 1), 1.0 / hw, dtype=jnp.float32))  # (B*HW, B)

    flops = (2 * C_OUT * kkc * (b * hw)        # conv matmul
             + 2 * C_OUT * (b * hw) * b        # pooling matmul
             + 2 * NUM_CLASSES * C_OUT * b)    # fc matmul
    transcendentals = NUM_CLASSES * b          # softmax exp
    bytes_accessed = (patches_t.size * 2 + wconv_bf16.size * 2 + bconv2.size * 4
                      + pool_mat.size * 4 + wfc_t.size * 4 + bfc2.size * 4
                      + NUM_CLASSES * b * 4)

    # Single grid step (whole batch): all operands fit trivially in VMEM
    # (<100 KB total on every generation, far under the 64 MiB v7x limit).
    probs_t = pl.pallas_call(
        _classifier_kernel,
        out_shape=jax.ShapeDtypeStruct((NUM_CLASSES, b), jnp.float32),
        cost_estimate=pl.CostEstimate(flops=flops,
                                      transcendentals=transcendentals,
                                      bytes_accessed=bytes_accessed),
    )(patches_t, wconv_bf16, bconv2, pool_mat, wfc_t, bfc2)

    return probs_t.T                                             # (B, NUM_CLASSES)


# ---------------------------------------------------------------------------
# Deterministic parameter initialization (synthetic; no checkpoint loading)
# ---------------------------------------------------------------------------
def init_params(key):
    k1, k2, k3, k4 = jax.random.split(key, 4)
    # PyTorch conv weight layout (C_OUT, C_IN, KH, KW); convert to the matmul
    # form matching the patch feature order (ky, kx, cin): (C_OUT, K*K*C_IN).
    wconv_torch = jax.random.normal(k1, (C_OUT, C_IN, K, K), jnp.float32) * 0.1
    wconv_t = jnp.transpose(wconv_torch, (0, 2, 3, 1)).reshape(C_OUT, K * K * C_IN)
    bconv = jax.random.normal(k2, (C_OUT,), jnp.float32) * 0.1
    # PyTorch Linear weight layout is already (out_features, in_features).
    wfc_t = jax.random.normal(k3, (NUM_CLASSES, C_OUT), jnp.float32) * 0.1
    bfc = jax.random.normal(k4, (NUM_CLASSES,), jnp.float32) * 0.1
    return wconv_t, bconv, wfc_t, bfc


# ---------------------------------------------------------------------------
# Pure-JAX reference of the same forward pass (same bf16 conv-matmul path)
# ---------------------------------------------------------------------------
def reference_forward(x_nchw, params):
    wconv_t, bconv, wfc_t, bfc = params
    b = x_nchw.shape[0]
    patches_t = _im2col_transposed(x_nchw.astype(jnp.float32))   # (KKC, B*H*W)
    h = jnp.dot(wconv_t.astype(jnp.bfloat16), patches_t.astype(jnp.bfloat16),
                preferred_element_type=jnp.float32)              # (C_OUT, B*H*W)
    h = jnp.maximum(h + bconv.reshape(C_OUT, 1), 0.0)
    pooled = h.reshape(C_OUT, b, H * W).mean(axis=-1)            # (C_OUT, B)
    logits = wfc_t @ pooled + bfc.reshape(NUM_CLASSES, 1)        # (NC, B)
    return jax.nn.softmax(logits, axis=0).T                      # (B, NC)


if __name__ == "__main__":
    key = jax.random.PRNGKey(0)
    pkey, xkey = jax.random.split(key)
    params = init_params(pkey)

    # PyTorch-style NCHW input
    x = jax.random.normal(xkey, (BATCH, C_IN, H, W), jnp.float32)

    probs = image_classification_forward(x, params)
    probs = jax.block_until_ready(probs)

    ref = reference_forward(x, params)
    assert probs.shape == (BATCH, NUM_CLASSES)
    assert jnp.allclose(jnp.sum(probs, axis=1), 1.0, atol=1e-4)
    assert jnp.allclose(probs, ref, atol=1e-3, rtol=1e-3)

    print("KERNEL_OK")
</pallas_src>

<mosaic_0001>
module attributes {stable_mosaic.version = 11 : i64} {
  func.func @_classifier_kernel(%arg0: memref<36x512xbf16, #tpu.memory_space<vmem>>, %arg1: memref<32x36xbf16, #tpu.memory_space<vmem>>, %arg2: memref<32x1xf32, #tpu.memory_space<vmem>>, %arg3: memref<512x2xf32, #tpu.memory_space<vmem>>, %arg4: memref<10x32xf32, #tpu.memory_space<vmem>>, %arg5: memref<10x1xf32, #tpu.memory_space<vmem>>, %arg6: memref<10x2xf32, #tpu.memory_space<vmem>>) attributes {dimension_semantics = [], scalar_prefetch = 0 : i64, scratch_operands = 0 : i64, tpu.core_type = #tpu.core_type<tc>} {
    %c0 = arith.constant 0 : index
    %c0_0 = arith.constant 0 : index
    %0 = vector.load %arg1[%c0, %c0_0] : memref<32x36xbf16, #tpu.memory_space<vmem>>, vector<32x36xbf16>
    %c0_1 = arith.constant 0 : index
    %c0_2 = arith.constant 0 : index
    %1 = vector.load %arg0[%c0_1, %c0_2] : memref<36x512xbf16, #tpu.memory_space<vmem>>, vector<36x512xbf16>
    %cst = arith.constant dense<0.000000e+00> : vector<32x512xf32>
    %2 = tpu.matmul %0, %1, %cst {dimension_numbers = #tpu.dot_dimension_numbers<[1], [0], [0], [1], [0, 0, 1, 1], [], []>} : vector<32x36xbf16>, vector<36x512xbf16>, vector<32x512xf32> -> vector<32x512xf32>
    %c0_3 = arith.constant 0 : index
    %c0_4 = arith.constant 0 : index
    %3 = vector.load %arg2[%c0_3, %c0_4] : memref<32x1xf32, #tpu.memory_space<vmem>>, vector<32x1xf32>
    %4 = vector.broadcast %3 : vector<32x1xf32> to vector<32x512xf32>
    %5 = arith.addf %2, %4 : vector<32x512xf32>
    %cst_5 = arith.constant 0.000000e+00 : f32
    %6 = vector.broadcast %cst_5 : f32 to vector<32x512xf32>
    %7 = arith.maximumf %5, %6 : vector<32x512xf32>
    %c0_6 = arith.constant 0 : index
    %c0_7 = arith.constant 0 : index
    %8 = vector.load %arg3[%c0_6, %c0_7] : memref<512x2xf32, #tpu.memory_space<vmem>>, vector<512x2xf32>
    %cst_8 = arith.constant dense<0.000000e+00> : vector<32x2xf32>
    %9 = tpu.matmul %7, %8, %cst_8 {dimension_numbers = #tpu.dot_dimension_numbers<[1], [0], [0], [1], [0, 0, 1, 1], [], []>} : vector<32x512xf32>, vector<512x2xf32>, vector<32x2xf32> -> vector<32x2xf32>
    %c0_9 = arith.constant 0 : index
    %c0_10 = arith.constant 0 : index
    %10 = vector.load %arg4[%c0_9, %c0_10] : memref<10x32xf32, #tpu.memory_space<vmem>>, vector<10x32xf32>
    %cst_11 = arith.constant dense<0.000000e+00> : vector<10x2xf32>
    %11 = tpu.matmul %10, %9, %cst_11 {dimension_numbers = #tpu.dot_dimension_numbers<[1], [0], [0], [1], [0, 0, 1, 1], [], []>} : vector<10x32xf32>, vector<32x2xf32>, vector<10x2xf32> -> vector<10x2xf32>
    %c0_12 = arith.constant 0 : index
    %c0_13 = arith.constant 0 : index
    %12 = vector.load %arg5[%c0_12, %c0_13] : memref<10x1xf32, #tpu.memory_space<vmem>>, vector<10x1xf32>
    %13 = vector.broadcast %12 : vector<10x1xf32> to vector<10x2xf32>
    %14 = arith.addf %11, %13 : vector<10x2xf32>
    %cst_14 = arith.constant dense<0xFF800000> : vector<2xf32>
    %15 = vector.multi_reduction <maximumf>, %14, %cst_14 [0] : vector<10x2xf32> to vector<2xf32>
    %16 = vector.shape_cast %15 : vector<2xf32> to vector<1x2xf32>
    %17 = vector.broadcast %16 : vector<1x2xf32> to vector<10x2xf32>
    %18 = arith.subf %14, %17 : vector<10x2xf32>
    %19 = math.exp %18 : vector<10x2xf32>
    %cst_15 = arith.constant dense<0.000000e+00> : vector<2xf32>
    %20 = vector.multi_reduction <add>, %19, %cst_15 [0] : vector<10x2xf32> to vector<2xf32>
    %21 = vector.shape_cast %20 : vector<2xf32> to vector<1x2xf32>
    %22 = vector.broadcast %21 : vector<1x2xf32> to vector<10x2xf32>
    %23 = arith.divf %19, %22 : vector<10x2xf32>
    %c0_16 = arith.constant 0 : index
    %c0_17 = arith.constant 0 : index
    %24 = vector.load %arg6[%c0_16, %c0_17] : memref<10x2xf32, #tpu.memory_space<vmem>>, vector<10x2xf32>
    tpu.vector_store %arg6[%c0_16, %c0_17], %23 {strides = array<i32>} : memref<10x2xf32, #tpu.memory_space<vmem>>, vector<10x2xf32>,
    return
  }
}

</mosaic_0001>

<bundles_post_ra>
// kernel: tpu_custom_call.1
= control target key start
LH: loop header
LB: loop body
LE: loop exit
PB: predicated region body
PF: predicated region fallthrough
CT: control target
= control target key end

     0   :  { %v580_v2 = vmov 0   ;;  %vm129_vm0 = vcmask 1041408   ;;  %vm122_vm1 = vcmask 293888   ;;  %vm428_vm2 = vcmask 261120   ;;  %s916_s0 = inlined_call_operand.vmem [shape: bf16[36,512], index: 0, kind: input, shape index: {}]   ;;  %s917_s2 = inlined_call_operand.vmem [shape: f32[32,1], index: 2, kind: input, shape index: {}]   ;;  %s918_s1 = inlined_call_operand.vmem [shape: bf16[32,36], index: 1, kind: input, shape index: {}]   ;;  %s919_s3 = inlined_call_operand.vmem [shape: f32[512,2], index: 3, kind: input, shape index: {}]   ;;  %s920_s5 = inlined_call_operand.vmem [shape: f32[10,1], index: 5, kind: input, shape index: {}]   ;;  %s921_s4 = inlined_call_operand.vmem [shape: f32[10,32], index: 4, kind: input, shape index: {}]   ;;  %s922_s6 = inlined_call_operand.vmem [shape: f32[10,2], index: 6, kind: output, shape index: {}]  }
   0x1   :  { %v36_v0 = vld [vmem:[%s916_s0 + $0x40] sm:$0x33]  ;;  %v37_v1 = vld [vmem:[%s916_s0 + $0x48] sm:$0x33]  ;;  %571 = vset.pattern.permute.xlu0 %v580_v2  ;;  %572 = vset.pattern.permute.xlu1 %v580_v2  ;;  %v564_v8 = vld [vmem:[%s916_s0 + $0x2c] sm:$0xf0] }
   0x2   :  { %v98_v3 = vunpack.c.l.b16 %v36_v0  ;;  %v99_v4 = vunpack.c.h.b16 %v36_v0  ;;  %v100_v5 = vunpack.c.l.b16 %v37_v1  ;;  %v101_v6 = vunpack.c.h.b16 %v37_v1  ;;  %573 = vset.pattern.permute.xlu2 %v580_v2  ;;  %v532_v7 = vld [vmem:[%s916_s0 + $0x20] sm:$0xf]  ;;  %v562_v13 = vld [vmem:[%s916_s0 + $0x24] sm:$0xf]  ;;  %v534_v14 = vld [vmem:[%s916_s0 + $0x30] sm:$0xf0] }
   0x3   :  { %v540_v15 = vld [vmem:[%s916_s0 + $0x28] sm:$0xf]  ;;  %v565_v16 = vld [vmem:[%s916_s0 + $0x34] sm:$0xf0]  ;;  %v563_v17 = vld [vmem:[%s916_s0 + $0x2c] sm:$0xf]  ;;  %v533_v24 = vor.u32 %v564_v8, %v532_v7  ;;  %v537_v25 = vor.u32 %v562_v13, %v534_v14 }
   0x4   :  { %v110_v9 = vpack.c.b16 %v98_v3, %v98_v3  ;;  %v111_v10 = vpack.c.b16 %v99_v4, %v99_v4  ;;  %v112_v11 = vpack.c.b16 %v100_v5, %v100_v5  ;;  %v113_v12 = vpack.c.b16 %v101_v6, %v101_v6  ;;  %v542_v18 = vld [vmem:[%s916_s0 + $0x38] sm:$0xf0]  ;;  %v516_v23 = vld [vmem:[%s916_s0] sm:$0xf]  ;;  %v560_v26 = vld [vmem:[%s916_s0 + $0xc] sm:$0xf0] }
   0x5   :  { %v558_v27 = vld [vmem:[%s916_s0 + $0x4] sm:$0xf]  ;;  %v518_v28 = vld [vmem:[%s916_s0 + $0x10] sm:$0xf0]  ;;  %v541_v29 = vor.u32 %v565_v16, %v540_v15  ;;  %v545_v30 = vor.u32 %v563_v17, %v542_v18  ;;  %v524_v31 = vld [vmem:[%s916_s0 + $0x8] sm:$0xf]  ;;  %v517_v37 = vor.u32 %v560_v26, %v516_v23 }
   0x6   :  { %v131_v19 = vsel %vm129_vm0, %v110_v9, 0  ;;  %v134_v20 = vsel %vm129_vm0, %v111_v10, 0  ;;  %v137_v21 = vsel %vm129_vm0, %v112_v11, 0  ;;  %v140_v22 = vsel %vm129_vm0, %v113_v12, 0  ;;  %v561_v32 = vld [vmem:[%s916_s0 + $0x14] sm:$0xf0] }
   0x7   :  { %147 = vmatpush.bf16.msra.mxu0 %v131_v19  ;;  %166 = vmatpush.bf16.msra.mxu1 %v134_v20  ;;  %v38_v33 = vld [vmem:[%s917_s2] sm:$0xff]  ;;  %v559_v34 = vld [vmem:[%s916_s0 + $0xc] sm:$0xf]  ;;  %v526_v35 = vld [vmem:[%s916_s0 + $0x18] sm:$0xf0]  ;;  %v521_v38 = vor.u32 %v558_v27, %v518_v28  ;;  %v525_v39 = vor.u32 %v561_v32, %v524_v31  ;;  %vm458_vm3 = vcmask 15360  }
   0x8   :  { %185 = vmatpush.bf16.msra.mxu2 %v137_v21  ;;  %204 = vmatpush.bf16.msra.mxu3 %v140_v22  ;;  %v40_v36 = vld [vmem:[%s917_s2 + $0x10] sm:$0xff]  ;;  %v529_v40 = vor.u32 %v559_v34, %v526_v35  ;;  %v556_v41 = vld [vmem:[%s918_s1] sm:$0xff]  ;;  %v39_v42 = vld [vmem:[%s917_s2 + $0x8] sm:$0xff]  ;;  %vm460_vm4 = vcmask 9216  }
   0x9   :  { %44 = vperm.xlu0 %571, %v38_v33   ;;  %54 = vperm.xlu1 %572, %v40_v36   ;;  %v249_v43 = vld [vmem:[%s919_s3 + $0x78] sm:$0xff]  ;;  %v248_v46 = vld [vmem:[%s919_s3 + $0x70] sm:$0xff]  ;;  %v247_v50 = vld [vmem:[%s919_s3 + $0x68] sm:$0xff] }
   0xa   :  { %v41_v44 = vld [vmem:[%s917_s2 + $0x18] sm:$0xff]  ;;  %v264_v48 = vld [vmem:[%s919_s3 + $0xf0] sm:$0xff]  ;;  %v263_v52 = vld [vmem:[%s919_s3 + $0xe8] sm:$0xff] }
   0xb   :  { %148 = vmatpush.bf16.msra.mxu0 %v533_v24  ;;  %167 = vmatpush.bf16.msra.mxu1 %v537_v25  ;;  %v265_v45 = vld [vmem:[%s919_s3 + $0xf8] sm:$0xff]  ;;  %v280_v51 = vld [vmem:[%s919_s3 + $0x170] sm:$0xff]  ;;  %v246_v54 = vld [vmem:[%s919_s3 + $0x60] sm:$0xff] }
   0xc   :  { %186 = vmatpush.bf16.msra.mxu2 %v541_v29  ;;  %205 = vmatpush.bf16.msra.mxu3 %v545_v30  ;;  %v281_v47 = vld [vmem:[%s919_s3 + $0x178] sm:$0xff]  ;;  %v296_v53 = vld [vmem:[%s919_s3 + $0x1f0] sm:$0xff]  ;;  %v279_v55 = vld [vmem:[%s919_s3 + $0x168] sm:$0xff] }
   0xd   :  { %v297_v49 = vld [vmem:[%s919_s3 + $0x1f8] sm:$0xff]  ;;  %v262_v56 = vld [vmem:[%s919_s3 + $0xe0] sm:$0xff]  ;;  %v295_v57 = vld [vmem:[%s919_s3 + $0x1e8] sm:$0xff] }
   0xe   :  { %v245_v58 = vld [vmem:[%s919_s3 + $0x58] sm:$0xff]  ;;  %v278_v59 = vld [vmem:[%s919_s3 + $0x160] sm:$0xff]  ;;  %v244_v62 = vld [vmem:[%s919_s3 + $0x50] sm:$0xff] }
   0xf   :  { %149 = vmatpush.bf16.msra.mxu0 %v517_v37  ;;  %168 = vmatpush.bf16.msra.mxu1 %v521_v38  ;;  %v261_v60 = vld [vmem:[%s919_s3 + $0xd8] sm:$0xff]  ;;  %v294_v61 = vld [vmem:[%s919_s3 + $0x1e0] sm:$0xff]  ;;  %v260_v0 = vld [vmem:[%s919_s3 + $0xd0] sm:$0xff] }
  0x10   :  { %187 = vmatpush.bf16.msra.mxu2 %v525_v39  ;;  %206 = vmatpush.bf16.msra.mxu3 %v529_v40  ;;  %v277_v63 = vld [vmem:[%s919_s3 + $0x158] sm:$0xff]  ;;  %v243_v2 = vld [vmem:[%s919_s3 + $0x48] sm:$0xff]  ;;  %v276_v3 = vld [vmem:[%s919_s3 + $0x150] sm:$0xff] }
  0x11   :  { %49 = vperm.xlu0 %571, %v39_v42   ;;  %59 = vperm.xlu1 %572, %v41_v44   ;;  %v293_v1 = vld [vmem:[%s919_s3 + $0x1d8] sm:$0xff]  ;;  %v259_v4 = vld [vmem:[%s919_s3 + $0xc8] sm:$0xff]  ;;  %v292_v5 = vld [vmem:[%s919_s3 + $0x1d0] sm:$0xff] }
  0x12   :  { %546 = vmatmul.msk.bf16.vlgmr.msra.gmra.mxu0 %vm122_vm1, %v556_v41  ;;  %548 = vmatmul.msk.bf16.vlgmr.msra.gmra.mxu1 %vm122_vm1, %v556_v41  ;;  %v557_v6 = vld [vmem:[%s918_s1 + $0x8] sm:$0xff]  ;;  %v242_v7 = vld [vmem:[%s919_s3 + $0x40] sm:$0xff]  ;;  %v241_v10 = vld [vmem:[%s919_s3 + $0x38] sm:$0xff] }
  0x13   :  { %298 = vmatpush.msrb.mxu0 %v249_v43  ;;  %550 = vmatmul.msk.bf16.vlgmr.msra.gmra.mxu2 %vm122_vm1, %v556_v41  ;;  %v275_v8 = vld [vmem:[%s919_s3 + $0x148] sm:$0xff]  ;;  %v258_v9 = vld [vmem:[%s919_s3 + $0xc0] sm:$0xff]  ;;  %v257_v13 = vld [vmem:[%s919_s3 + $0xb8] sm:$0xff] }
  0x14   :  { %552 = vmatmul.msk.bf16.vlgmr.msra.gmra.mxu3 %vm122_vm1, %v556_v41  ;;  %327 = vmatpush.msrb.mxu1 %v265_v45  ;;  %v291_v11 = vld [vmem:[%s919_s3 + $0x1c8] sm:$0xff]  ;;  %v274_v12 = vld [vmem:[%s919_s3 + $0x140] sm:$0xff]  ;;  %v240_v14 = vld [vmem:[%s919_s3 + $0x30] sm:$0xff] }
  0x15   :  { %299 = vmatpush.msrb.mxu0 %v248_v46  ;;  %356 = vmatpush.msrb.mxu2 %v281_v47  ;;  %v290_v15 = vld [vmem:[%s919_s3 + $0x1c0] sm:$0xff]  ;;  %v273_v16 = vld [vmem:[%s919_s3 + $0x138] sm:$0xff]  ;;  %v256_v17 = vld [vmem:[%s919_s3 + $0xb0] sm:$0xff] }
  0x16   :  { %328 = vmatpush.msrb.mxu1 %v264_v48  ;;  %385 = vmatpush.msrb.mxu3 %v297_v49  ;;  %v239_v18 = vld [vmem:[%s919_s3 + $0x28] sm:$0xff]  ;;  %v289_v19 = vld [vmem:[%s919_s3 + $0x1b8] sm:$0xff]  ;;  %v238_v21 = vld [vmem:[%s919_s3 + $0x20] sm:$0xff] }
  0x17   :  { %300 = vmatpush.msrb.mxu0 %v247_v50  ;;  %357 = vmatpush.msrb.mxu2 %v280_v51  ;;  %v255_v20 = vld [vmem:[%s919_s3 + $0xa8] sm:$0xff]  ;;  %v254_v22 = vld [vmem:[%s919_s3 + $0xa0] sm:$0xff]  ;;  %v237_v23 = vld [vmem:[%s919_s3 + $0x18] sm:$0xff] }
  0x18   :  { %329 = vmatpush.msrb.mxu1 %v263_v52  ;;  %386 = vmatpush.msrb.mxu3 %v296_v53  ;;  %v253_v24 = vld [vmem:[%s919_s3 + $0x98] sm:$0xff]  ;;  %v272_v25 = vld [vmem:[%s919_s3 + $0x130] sm:$0xff]  ;;  %v271_v29 = vld [vmem:[%s919_s3 + $0x128] sm:$0xff] }
  0x19   :  { %301 = vmatpush.msrb.mxu0 %v246_v54  ;;  %358 = vmatpush.msrb.mxu2 %v279_v55  ;;  %v288_v26 = vld [vmem:[%s919_s3 + $0x1b0] sm:$0xff]  ;;  %v287_v30 = vld [vmem:[%s919_s3 + $0x1a8] sm:$0xff]  ;;  %v270_v33 = vld [vmem:[%s919_s3 + $0x120] sm:$0xff] }
  0x1a   :  { %330 = vmatpush.msrb.mxu1 %v262_v56  ;;  %387 = vmatpush.msrb.mxu3 %v295_v57  ;;  %v236_v27 = vld [vmem:[%s919_s3 + $0x10] sm:$0xff]  ;;  %v235_v31 = vld [vmem:[%s919_s3 + $0x8] sm:$0xff]  ;;  %v286_v34 = vld [vmem:[%s919_s3 + $0x1a0] sm:$0xff] }
  0x1b   :  { %302 = vmatpush.msrb.mxu0 %v245_v58  ;;  %359 = vmatpush.msrb.mxu2 %v278_v59  ;;  %v252_v28 = vld [vmem:[%s919_s3 + $0x90] sm:$0xff]  ;;  %v251_v32 = vld [vmem:[%s919_s3 + $0x88] sm:$0xff]  ;;  %v234_v35 = vld [vmem:[%s919_s3] sm:$0xff] }
  0x1c   :  { %331 = vmatpush.msrb.mxu1 %v261_v60  ;;  %388 = vmatpush.msrb.mxu3 %v294_v61  ;;  %v250_v36 = vld [vmem:[%s919_s3 + $0x80] sm:$0xff]  ;;  %v269_v37 = vld [vmem:[%s919_s3 + $0x118] sm:$0xff]  ;;  %v268_v39 = vld [vmem:[%s919_s3 + $0x110] sm:$0xff] }
  0x1d   :  { %303 = vmatpush.msrb.mxu0 %v244_v62  ;;  %360 = vmatpush.msrb.mxu2 %v277_v63  ;;  %v285_v38 = vld [vmem:[%s919_s3 + $0x198] sm:$0xff]  ;;  %v284_v40 = vld [vmem:[%s919_s3 + $0x190] sm:$0xff]  ;;  %v267_v41 = vld [vmem:[%s919_s3 + $0x108] sm:$0xff] }
  0x1e   :  { %332 = vmatpush.msrb.mxu1 %v260_v0  ;;  %389 = vmatpush.msrb.mxu3 %v293_v1  ;;  %v283_v42 = vld [vmem:[%s919_s3 + $0x188] sm:$0xff]  ;;  %v266_v43 = vld [vmem:[%s919_s3 + $0x100] sm:$0xff] }
  0x1f   :  { %304 = vmatpush.msrb.mxu0 %v243_v2  ;;  %361 = vmatpush.msrb.mxu2 %v276_v3  ;;  %v282_v44 = vld [vmem:[%s919_s3 + $0x180] sm:$0xff] }
  0x20   :  { %333 = vmatpush.msrb.mxu1 %v259_v4  ;;  %390 = vmatpush.msrb.mxu3 %v292_v5 }
  0x21   :  { %305 = vmatpush.msrb.mxu0 %v242_v7  ;;  %362 = vmatpush.msrb.mxu2 %v275_v8 }
  0x22   :  { %547 = vmatmul.msk.bf16.gmra.mxu0 %vm122_vm1, %v557_v6  ;;  %549 = vmatmul.msk.bf16.gmra.mxu1 %vm122_vm1, %v557_v6 }
  0x23   :  { %551 = vmatmul.msk.bf16.gmra.mxu2 %vm122_vm1, %v557_v6  ;;  %334 = vmatpush.msrb.mxu1 %v258_v9 }
  0x24   :  { %553 = vmatmul.msk.bf16.gmra.mxu3 %vm122_vm1, %v557_v6  ;;  %306 = vmatpush.msrb.mxu0 %v241_v10 }
  0x25   :  { %391 = vmatpush.msrb.mxu3 %v291_v11  ;;  %363 = vmatpush.msrb.mxu2 %v274_v12 }
  0x26   :  { %335 = vmatpush.msrb.mxu1 %v257_v13  ;;  %307 = vmatpush.msrb.mxu0 %v240_v14 }
  0x27   :  { %392 = vmatpush.msrb.mxu3 %v290_v15  ;;  %364 = vmatpush.msrb.mxu2 %v273_v16 }
  0x28   :  { %336 = vmatpush.msrb.mxu1 %v256_v17  ;;  %308 = vmatpush.msrb.mxu0 %v239_v18 }
  0x29   :  { %393 = vmatpush.msrb.mxu3 %v289_v19  ;;  %365 = vmatpush.msrb.mxu2 %v272_v25 }
  0x2a   :  { %337 = vmatpush.msrb.mxu1 %v255_v20  ;;  %309 = vmatpush.msrb.mxu0 %v238_v21 }
  0x2b   :  { %394 = vmatpush.msrb.mxu3 %v288_v26  ;;  %366 = vmatpush.msrb.mxu2 %v271_v29 }
  0x2c   :  { %338 = vmatpush.msrb.mxu1 %v254_v22  ;;  %310 = vmatpush.msrb.mxu0 %v237_v23 }
  0x2d   :  { %395 = vmatpush.msrb.mxu3 %v287_v30  ;;  %367 = vmatpush.msrb.mxu2 %v270_v33 }
  0x2e   :  { %339 = vmatpush.msrb.mxu1 %v253_v24  ;;  %311 = vmatpush.msrb.mxu0 %v236_v27 }
  0x2f   :  { %396 = vmatpush.msrb.mxu3 %v286_v34  ;;  %368 = vmatpush.msrb.mxu2 %v269_v37 }
  0x30   :  { %340 = vmatpush.msrb.mxu1 %v252_v28  ;;  %312 = vmatpush.msrb.mxu0 %v235_v31 }
  0x31   :  { %397 = vmatpush.msrb.mxu3 %v285_v38  ;;  %369 = vmatpush.msrb.mxu2 %v268_v39  ;;  %v416_v39 = vld [vmem:[%s920_s5] sm:$0xff] }
  0x32   :  { %341 = vmatpush.msrb.mxu1 %v251_v32  ;;  %313 = vmatpush.msrb.mxu0 %v234_v35 }
  0x33   :  { %398 = vmatpush.msrb.mxu3 %v284_v40  ;;  %370 = vmatpush.msrb.mxu2 %v267_v41 }
  0x34   :  { %342 = vmatpush.msrb.mxu1 %v250_v36  ;;  %420 = vperm.xlu2 %573, %v416_v39  }
  0x35   :  { %399 = vmatpush.msrb.mxu3 %v283_v42  ;;  %371 = vmatpush.msrb.mxu2 %v266_v43 }
  0x37   :  { %400 = vmatpush.msrb.mxu3 %v282_v44  ;;  %v417_v44 = vld [vmem:[%s920_s5 + $0x8] sm:$0x3] }
  0x3c   :  { %425 = vperm.xlu2 %573, %v417_v44  }
  0x7b   :  { %v45_v45 = vpop.permute.xlu0 %44  ;;  %v55_v1 = vpop.permute.xlu1 %54 }
  0x83   :  { %v50_v52 = vpop.permute.xlu0 %49  ;;  %v60_v14 = vpop.permute.xlu1 %59 }
  0x8f   :  { %v151_v46 = vpop.f32.mrf.mxu0  ;;  %v170_v47 = vpop.f32.mrf.mxu1 }
  0x90   :  { %v152_v48 = vadd.f32 %v151_v46, %v45_v45  ;;  %v171_v49 = vadd.f32 %v170_v47, %v45_v45 }
  0x92   :  { %v218_v50 = vmax.f32 %v152_v48, 0.0  ;;  %v219_v51 = vmax.f32 %v171_v49, 0.0 }
  0x94   :  { %314 = vmatmul.f32.vlgmr.msrb.gmra.mxu0 %v218_v50  ;;  %343 = vmatmul.f32.vlgmr.msrb.gmra.mxu1 %v219_v51 }
  0x96   :  { %v189_v53 = vpop.f32.mrf.mxu2 }
  0x97   :  { %v208_v54 = vpop.f32.mrf.mxu3  ;;  %v190_v55 = vadd.f32 %v189_v53, %v45_v45  ;;  %v153_v57 = vpop.f32.mrf.mxu0 }
  0x98   :  { %v209_v56 = vadd.f32 %v208_v54, %v45_v45  ;;  %v172_v58 = vpop.f32.mrf.mxu1  ;;  %v154_v59 = vadd.f32 %v153_v57, %v50_v52 }
  0x99   :  { %v173_v60 = vadd.f32 %v172_v58, %v50_v52  ;;  %v220_v61 = vmax.f32 %v190_v55, 0.0 }
  0x9a   :  { %v221_v62 = vmax.f32 %v209_v56, 0.0  ;;  %v222_v63 = vmax.f32 %v154_v59, 0.0 }
  0x9b   :  { %v223_v0 = vmax.f32 %v173_v60, 0.0  ;;  %372 = vmatmul.f32.vlgmr.msrb.gmra.mxu2 %v220_v61 }
  0x9c   :  { %401 = vmatmul.f32.vlgmr.msrb.gmra.mxu3 %v221_v62  ;;  %317 = vmatmul.f32.gmra.mxu0 %v222_v63  ;;  %v414_v63 = vld [vmem:[%s921_s4] sm:$0xff] }
  0x9d   :  { %346 = vmatmul.f32.gmra.mxu1 %v223_v0  ;;  %v415_v0 = vld [vmem:[%s921_s4 + $0x8] sm:$0x3] }
  0x9e   :  { %v191_v2 = vpop.f32.mrf.mxu2 }
  0x9f   :  { %v210_v3 = vpop.f32.mrf.mxu3  ;;  %v192_v4 = vadd.f32 %v191_v2, %v50_v52  ;;  %v156_v6 = vpop.f32.mrf.mxu0 }
  0xa0   :  { %v211_v5 = vadd.f32 %v210_v3, %v50_v52  ;;  %v175_v7 = vpop.f32.mrf.mxu1  ;;  %v157_v8 = vadd.f32 %v156_v6, %v55_v1 }
  0xa1   :  { %v176_v9 = vadd.f32 %v175_v7, %v55_v1  ;;  %v224_v10 = vmax.f32 %v192_v4, 0.0 }
  0xa2   :  { %v225_v11 = vmax.f32 %v211_v5, 0.0  ;;  %v226_v12 = vmax.f32 %v157_v8, 0.0 }
  0xa3   :  { %v227_v13 = vmax.f32 %v176_v9, 0.0  ;;  %375 = vmatmul.f32.gmra.mxu2 %v224_v10 }
  0xa4   :  { %404 = vmatmul.f32.gmra.mxu3 %v225_v11  ;;  %320 = vmatmul.f32.gmra.mxu0 %v226_v12 }
  0xa5   :  { %349 = vmatmul.f32.gmra.mxu1 %v227_v13 }
  0xa6   :  { %v194_v15 = vpop.f32.mrf.mxu2 }
  0xa7   :  { %v213_v16 = vpop.f32.mrf.mxu3  ;;  %v195_v17 = vadd.f32 %v194_v15, %v55_v1  ;;  %v158_v19 = vpop.f32.mrf.mxu0 }
  0xa8   :  { %v214_v18 = vadd.f32 %v213_v16, %v55_v1  ;;  %v177_v20 = vpop.f32.mrf.mxu1  ;;  %v159_v21 = vadd.f32 %v158_v19, %v60_v14  ;;  %v421_v1 = vpop.permute.xlu2 %420 }
  0xa9   :  { %v178_v22 = vadd.f32 %v177_v20, %v60_v14  ;;  %v228_v23 = vmax.f32 %v195_v17, 0.0 }
  0xaa   :  { %v229_v24 = vmax.f32 %v214_v18, 0.0  ;;  %v230_v25 = vmax.f32 %v159_v21, 0.0 }
  0xab   :  { %v231_v26 = vmax.f32 %v178_v22, 0.0  ;;  %378 = vmatmul.f32.gmra.mxu2 %v228_v23 }
  0xac   :  { %407 = vmatmul.f32.gmra.mxu3 %v229_v24  ;;  %323 = vmatmul.f32.gmra.mxu0 %v230_v25 }
  0xad   :  { %352 = vmatmul.f32.gmra.mxu1 %v231_v26 }
  0xae   :  { %v196_v27 = vpop.f32.mrf.mxu2 }
  0xaf   :  { %v215_v28 = vpop.f32.mrf.mxu3  ;;  %v197_v29 = vadd.f32 %v196_v27, %v60_v14 }
  0xb0   :  { %v216_v30 = vadd.f32 %v215_v28, %v60_v14  ;;  %v426_v2 = vpop.permute.xlu2 %425 }
  0xb1   :  { %v232_v31 = vmax.f32 %v197_v29, 0.0 }
  0xb2   :  { %v233_v32 = vmax.f32 %v216_v30, 0.0 }
  0xb3   :  { %381 = vmatmul.f32.gmra.mxu2 %v232_v31 }
  0xb4   :  { %410 = vmatmul.f32.gmra.mxu3 %v233_v32 }
 0x111   :  { %v315_v33 = vpop.f32.mrf.mxu0  ;;  %v344_v34 = vpop.f32.mrf.mxu1 }
 0x112   :  { %v345_v56 = vadd.f32 %v344_v34, %v315_v33 }
 0x119   :  { %v318_v35 = vpop.f32.mrf.mxu0 }
 0x11a   :  { %v347_v36 = vpop.f32.mrf.mxu1 }
 0x11b   :  { %v348_v52 = vadd.f32 %v347_v36, %v318_v35 }
 0x11e   :  { %v373_v37 = vpop.f32.mrf.mxu2 }
 0x11f   :  { %v402_v38 = vpop.f32.mrf.mxu3  ;;  %v374_v59 = vadd.f32 %v373_v37, %v345_v56 }
 0x121   :  { %v321_v42 = vpop.f32.mrf.mxu0  ;;  %v403_v62 = vadd.f32 %v402_v38, %v374_v59 }
 0x122   :  { %v350_v43 = vpop.f32.mrf.mxu1 }
 0x123   :  { %v351_v49 = vadd.f32 %v350_v43, %v321_v42 }
 0x126   :  { %v376_v40 = vpop.f32.mrf.mxu2 }
 0x127   :  { %v405_v41 = vpop.f32.mrf.mxu3  ;;  %v377_v57 = vadd.f32 %v376_v40, %v348_v52 }
 0x129   :  { %v324_v47 = vpop.f32.mrf.mxu0  ;;  %v406_v61 = vadd.f32 %v405_v41, %v377_v57 }
 0x12a   :  { %v353_v48 = vpop.f32.mrf.mxu1 }
 0x12b   :  { %v354_v50 = vadd.f32 %v353_v48, %v324_v47 }
 0x12e   :  { %v379_v45 = vpop.f32.mrf.mxu2 }
 0x12f   :  { %v408_v46 = vpop.f32.mrf.mxu3  ;;  %v380_v53 = vadd.f32 %v379_v45, %v351_v49 }
 0x131   :  { %v409_v60 = vadd.f32 %v408_v46, %v380_v53 }
 0x136   :  { %v382_v51 = vpop.f32.mrf.mxu2 }
 0x137   :  { %v383_v54 = vadd.f32 %v382_v51, %v354_v50  ;;  %v411_v55 = vpop.f32.mrf.mxu3 }
 0x139   :  { %v412_v58 = vadd.f32 %v411_v55, %v383_v54 }
 0x13b   :  { %447 = vmatpush.msra.mxu0 %v412_v58  ;;  %566 = vmatpush.msra.mxu1 %v412_v58 }
 0x13d   :  { %448 = vmatpush.msra.mxu0 %v409_v60  ;;  %567 = vmatpush.msra.mxu1 %v409_v60 }
 0x13f   :  { %449 = vmatpush.msra.mxu0 %v406_v61  ;;  %568 = vmatpush.msra.mxu1 %v406_v61 }
 0x141   :  { %450 = vmatpush.msra.mxu0 %v403_v62  ;;  %569 = vmatpush.msra.mxu1 %v403_v62 }
 0x142   :  { %554 = vmatmul.msk.f32.vlgmr.msra.gmra.mxu0 %vm428_vm2, %v414_v63  ;;  %555 = vmatmul.msk.f32.vlgmr.msra.gmra.mxu1 %vm428_vm2, %v415_v0 }
 0x1bf   :  { %v452_v3 = vpop.f32.mrf.mxu0  ;;  %v455_v4 = vpop.f32.mrf.mxu1 }
 0x1c0   :  { %v453_v5 = vadd.f32 %v452_v3, %v421_v1  ;;  %v456_v6 = vadd.f32 %v455_v4, %v426_v2 }
 0x1c2   :  { %v459_v7 = vsel %vm458_vm3, %v453_v5, -inf  ;;  %v461_v8 = vsel %vm460_vm4, %v456_v6, -inf }
 0x1c3   :  { %v462_v9 = vmax.f32 %v459_v7, %v461_v8 }
 0x1c5   :  { %v463_v10 = vrot.slane %v462_v9, 4 }
 0x1c7   :  { %v464_v11 = vmax.f32 %v462_v9, %v463_v10 }
 0x1c9   :  { %v465_v12 = vrot.slane %v464_v11, 2 }
 0x1cb   :  { %v466_v13 = vmax.f32 %v464_v11, %v465_v12 }
 0x1cd   :  { %v467_v14 = vrot.slane %v466_v13, 1 }
 0x1cf   :  { %v468_v15 = vmax.f32 %v466_v13, %v467_v14 }
 0x1d1   :  { %v469_v16 = vsub.f32 %v453_v5, %v468_v15  ;;  %v470_v17 = vsub.f32 %v456_v6, %v468_v15 }
 0x1d3   :  { %v471_v18 = vmul.f32 1.442695, %v469_v16  ;;  %v473_v19 = vmul.f32 1.442695, %v470_v17 }
 0x1d5   :  { %574 = vpow2.f32 %v471_v18 }
 0x1d6   :  { %576 = vpow2.f32 %v473_v19 }
 0x1db   :  { %v575_v20 = vpop.eup %574 }
 0x1dc   :  { %v577_v21 = vpop.eup %576  ;;  %v475_v22 = vsel %vm458_vm3, %v575_v20, 0.0 }
 0x1dd   :  { %v476_v23 = vsel %vm460_vm4, %v577_v21, 0.0 }
 0x1de   :  { %v477_v24 = vadd.f32 %v476_v23, %v475_v22 }
 0x1e0   :  { %v478_v25 = vrot.slane %v477_v24, 4 }
 0x1e2   :  { %v479_v26 = vadd.f32 %v478_v25, %v477_v24 }
 0x1e4   :  { %v480_v27 = vrot.slane %v479_v26, 2 }
 0x1e6   :  { %v481_v28 = vadd.f32 %v480_v27, %v479_v26 }
 0x1e8   :  { %v482_v29 = vrot.slane %v481_v28, 1 }
 0x1ea   :  { %v483_v30 = vadd.f32 %v482_v29, %v481_v28 }
 0x1ec   :  { %578 = vrcp.f32 %v483_v30  ;;  %v495_v34 = vand.u32 2147483648, %v483_v30  ;;  %v493_v36 = vand.u32 2147483647, %v483_v30  ;;  %vm489_vm6 = vweird.f32 %v483_v30 }
 0x1ee   :  { %v496_v38 = vor.u32 1.1754944e-38, %v495_v34  ;;  %vm494_vm8 = vcmp.eq.f32.partialorder %v493_v36, 8.507059e+37 }
 0x1f2   :  { %v579_v31 = vpop.eup %578 }
 0x1f3   :  { %v485_v32 = vmul.f32 %v579_v31, %v483_v30  ;;  %vm490_vm5 = vweird.f32 %v579_v31 }
 0x1f4   :  { %vm491_vm7 = vmor %vm489_vm6, %vm490_vm5 }
 0x1f5   :  { %v486_v33 = vsub.f32 1.0, %v485_v32 }
 0x1f7   :  { %v487_v35 = vmul.f32 %v579_v31, %v486_v33 }
 0x1f9   :  { %v488_v37 = vadd.f32 %v579_v31, %v487_v35 }
 0x1fb   :  { %v492_v39 = vsel %vm491_vm7, %v579_v31, %v488_v37 }
 0x1fc   :  { %v497_v40 = vsel %vm494_vm8, %v496_v38, %v492_v39 }
 0x1fd   :  { %v498_v41 = vmul.f32 %v575_v20, %v497_v40  ;;  %v499_v42 = vmul.f32 %v577_v21, %v497_v40 }
 0x1ff   :  { %500 = vst.msk [vmem:[%s922_s6] sm:$0xff] %vm458_vm3, %v498_v41 }
 0x200   :  { %501 = vst.msk [vmem:[%s922_s6 + $0x8] sm:$0x3] %vm460_vm4, %v499_v42 }

</bundles_post_ra>
